<compile_context>
chip_gen: v5e
topology: v5e:2x2
jax: 0.10.0
libtpu: 0.0.40
codegen_flags: <defaults>
</compile_context>

<pallas_src>
import functools
import math

import numpy as np
import jax
import jax.numpy as jnp
from jax.experimental import pallas as pl
from jax.experimental.pallas import tpu as pltpu


# ----------------------------------------------------------------------------
# index computation (matches PyTorch nearest, recompute_scale_factor=False)
# ----------------------------------------------------------------------------
def _nearest_src_index(out_size: int, in_size: int, step: float) -> np.ndarray:
    # step = 1/scale_factor (scale given) or in/out (size given)
    src = np.floor(np.arange(out_size, dtype=np.float64) * step).astype(np.int64)
    return np.minimum(src, in_size - 1)


def _geometry(H, W, size, scale_factor):
    if size is not None:
        if isinstance(size, (tuple, list)):
            OH, OW = int(size[0]), int(size[1])
        else:
            OH = OW = int(size)
        step_h, step_w = H / OH, W / OW
    else:
        if isinstance(scale_factor, (tuple, list)):
            sh, sw = float(scale_factor[0]), float(scale_factor[1])
        else:
            sh = sw = float(scale_factor)
        OH, OW = int(math.floor(H * sh)), int(math.floor(W * sw))
        step_h, step_w = 1.0 / sh, 1.0 / sw
    src_h = _nearest_src_index(OH, H, step_h)
    src_w = _nearest_src_index(OW, W, step_w)
    return OH, OW, src_h, src_w


# ----------------------------------------------------------------------------
# device heuristics (affect tiling only, never results)
# ----------------------------------------------------------------------------
def _device_kind() -> str:
    try:
        return jax.devices()[0].device_kind.lower()
    except Exception:
        return ""


def _num_tensorcores() -> int:
    # Chips whose single JAX device spans two TensorCores (megacore / v7x).
    kind = _device_kind()
    for tag in ("v4", "v5p", "7x", "v7"):
        if tag in kind:
            return 2
    return 1


def _target_out_block_bytes() -> int:
    kind = _device_kind()
    if "v5 lite" in kind or "v5e" in kind or "v5lite" in kind:
        return 2 << 20   # 0.82 TB/s HBM: per-step overhead already <10% at 2 MiB
    return 8 << 20       # v6e / v7x: bigger tiles amortize the ~0.35 us/step cost


def _compiler_params(block_bytes_single_buffer: int) -> pltpu.CompilerParams:
    # Double-buffered pipeline + slack; stay under v7x's 64 MiB physical VMEM.
    need = 2 * block_bytes_single_buffer + (2 << 20)
    limit = int(min(max(need, 32 << 20), 56 << 20))
    return pltpu.CompilerParams(
        dimension_semantics=("parallel",), vmem_limit_bytes=limit)


def _sublane_packing(dtype) -> int:
    # 8 for f32, 16 for bf16, 32 for int8/fp8.
    return max(8, 32 // np.dtype(dtype).itemsize)


# ----------------------------------------------------------------------------
# Fast path: integer height replication (uniform row repeat)
# ----------------------------------------------------------------------------
def _uniform_copy_kernel(rep, ow, x_ref, o_ref):
    # Identity width mapping: pure replication, no MXU work at all.
    y = x_ref[...]
    for j in range(rep):                       # static; rep is a Python int
        o_ref[:, j * ow:(j + 1) * ow] = y


def _uniform_matmul_kernel(rep, ow, gwt_ref, x_ref, o_ref):
    # x_ref: (TM, W); gwt_ref: (W, OW) one-hot (exact nearest selection);
    # o_ref: (TM, rep*OW).  `rep` direct lane-dense slice stores (no concat temp).
    y = jnp.dot(x_ref[...], gwt_ref[...],
                preferred_element_type=jnp.float32).astype(o_ref.dtype)
    for j in range(rep):                       # static
        o_ref[:, j * ow:(j + 1) * ow] = y


def _upsample_uniform_rows(x, src_w, rep, OH, OW):
    N, C, H, W = x.shape
    R = N * C * H
    itemsize = x.dtype.itemsize
    packing = _sublane_packing(x.dtype)

    identity_w = (OW == W) and bool(np.array_equal(src_w, np.arange(W)))

    row_in_bytes = W * itemsize
    row_out_bytes = rep * OW * itemsize
    target = _target_out_block_bytes()

    tm = min(R, max(packing, target // max(1, row_out_bytes)))
    tm = max(packing, (tm // packing) * packing)
    # Dual-TC chips (v7x / megacore): keep >= 2 grid steps per core so the
    # pipeline overlaps; single-TC chips keep the largest tile (splitting a
    # small problem only adds per-step overhead).
    cores = _num_tensorcores()
    if cores > 1:
        min_steps = 2 * cores
        if R >= min_steps * packing and pl.cdiv(R, tm) < min_steps:
            tm = max(packing, ((R // min_steps) // packing) * packing)
    tm = min(tm, R)

    x2 = x.reshape(R, W)                       # free row-major view
    out_shape = jax.ShapeDtypeStruct((R, rep * OW), x.dtype)
    grid = (pl.cdiv(R, tm),)

    in_bytes = R * row_in_bytes
    out_bytes = R * row_out_bytes
    block_bytes = tm * (row_in_bytes + row_out_bytes)

    if identity_w:
        cost = pl.CostEstimate(flops=0, transcendentals=0,
                               bytes_accessed=in_bytes + out_bytes)
        out2 = pl.pallas_call(
            functools.partial(_uniform_copy_kernel, rep, OW),
            out_shape=out_shape,
            grid=grid,
            in_specs=[pl.BlockSpec((tm, W), lambda i: (i, 0))],
            out_specs=pl.BlockSpec((tm, rep * OW), lambda i: (i, 0)),
            compiler_params=_compiler_params(block_bytes),
            cost_estimate=cost,
        )(x2)
    else:
        gwt_np = np.zeros((W, OW), dtype=np.float32)
        gwt_np[src_w, np.arange(OW)] = 1.0
        gwt = jnp.asarray(gwt_np, dtype=x.dtype)   # one-hot: exact in bf16/f32
        gwt_bytes = W * OW * itemsize
        cost = pl.CostEstimate(flops=2 * R * W * OW, transcendentals=0,
                               bytes_accessed=in_bytes + out_bytes + gwt_bytes)
        out2 = pl.pallas_call(
            functools.partial(_uniform_matmul_kernel, rep, OW),
            out_shape=out_shape,
            grid=grid,
            in_specs=[
                pl.BlockSpec((W, OW), lambda i: (0, 0)),   # gwt, constant
                pl.BlockSpec((tm, W), lambda i: (i, 0)),   # input row block
            ],
            out_specs=pl.BlockSpec((tm, rep * OW), lambda i: (i, 0)),
            compiler_params=_compiler_params(block_bytes + gwt_bytes),
            cost_estimate=cost,
        )(gwt, x2)

    # (N*C*H, rep*OW) is exactly the row-major layout of (N, C, H*rep, OW)
    return out2.reshape(N, C, OH, OW)


# ----------------------------------------------------------------------------
# General path: arbitrary height mapping -> gh @ x @ gwt (fused width matmul)
# ----------------------------------------------------------------------------
def _general_kernel(tb, H, OH, gh_ref, gwt_ref, x_ref, o_ref):
    # x_ref: (tb*H, W); gh_ref: (OH, H); gwt_ref: (W, OW); o_ref: (tb*OH, OW).
    # One big-M width matmul across the whole plane batch, then the small
    # per-plane height selection.  Operands stay in the input dtype (one-hot
    # selection is exact); accumulation in f32.
    y = jnp.dot(x_ref[...], gwt_ref[...],
                preferred_element_type=jnp.float32).astype(x_ref.dtype)
    gh = gh_ref[...]
    for p in range(tb):                        # static; tb is small
        o_ref[p * OH:(p + 1) * OH, :] = jnp.dot(
            gh, y[p * H:(p + 1) * H, :],
            preferred_element_type=jnp.float32).astype(o_ref.dtype)


def _upsample_general(x, src_h, src_w, OH, OW):
    N, C, H, W = x.shape
    NC = N * C
    itemsize = x.dtype.itemsize

    gh_np = np.zeros((OH, H), dtype=np.float32)
    gh_np[np.arange(OH), src_h] = 1.0
    gh = jnp.asarray(gh_np, dtype=x.dtype)
    gwt_np = np.zeros((W, OW), dtype=np.float32)
    gwt_np[src_w, np.arange(OW)] = 1.0
    gwt = jnp.asarray(gwt_np, dtype=x.dtype)

    plane_in_bytes = H * W * itemsize
    plane_out_bytes = OH * OW * itemsize
    target = _target_out_block_bytes()

    tb = min(NC, max(1, target // max(1, plane_out_bytes)))
    cores = _num_tensorcores()
    if cores > 1:
        min_steps = 2 * cores
        if NC >= min_steps and pl.cdiv(NC, tb) < min_steps:
            tb = max(1, NC // min_steps)

    # Keep block second-to-last dims sublane(8)-aligned when tiling planes.
    if tb < NC:
        l_h = 8 // math.gcd(H, 8)
        l_o = 8 // math.gcd(OH, 8)
        l = l_h * l_o // math.gcd(l_h, l_o)    # lcm, divides 8
        tb = (tb // l) * l
        if tb <= 0:
            tb = min(l, NC)
        if tb >= NC:
            tb = NC

    x2 = x.reshape(NC * H, W)                  # free row-major view
    out_shape = jax.ShapeDtypeStruct((NC * OH, OW), x.dtype)
    grid = (pl.cdiv(NC, tb),)

    block_bytes = tb * (plane_in_bytes + plane_out_bytes)
    tab_bytes = (OH * H + W * OW) * itemsize
    cost = pl.CostEstimate(
        flops=2 * NC * H * W * OW + 2 * NC * OH * H * OW,
        transcendentals=0,
        bytes_accessed=NC * (plane_in_bytes + plane_out_bytes) + tab_bytes)

    out2 = pl.pallas_call(
        functools.partial(_general_kernel, tb, H, OH),
        out_shape=out_shape,
        grid=grid,
        in_specs=[
            pl.BlockSpec((OH, H), lambda i: (0, 0)),       # gh, constant
            pl.BlockSpec((W, OW), lambda i: (0, 0)),       # gwt, constant
            pl.BlockSpec((tb * H, W), lambda i: (i, 0)),   # tb full planes
        ],
        out_specs=pl.BlockSpec((tb * OH, OW), lambda i: (i, 0)),
        compiler_params=_compiler_params(block_bytes + tab_bytes),
        cost_estimate=cost,
    )(gh, gwt, x2)
    # (NC*OH, OW) is exactly the row-major layout of (N, C, OH, OW)
    return out2.reshape(N, C, OH, OW)


# ----------------------------------------------------------------------------
# Public wrapper: Interpolate2d(mode='nearest') forward
# ----------------------------------------------------------------------------
def interpolate2d_nearest(x: jax.Array, size=None, scale_factor=2.0) -> jax.Array:
    if not jnp.issubdtype(x.dtype, jnp.floating):
        # TODO(synk): integer/bool dtypes need a non-MXU gather path.
        raise NotImplementedError("interpolate2d_nearest supports floating dtypes only")
    N, C, H, W = x.shape
    OH, OW, src_h, src_w = _geometry(H, W, size, scale_factor)

    rep = OH // H if (OH % H == 0) else 0
    uniform_h = rep > 0 and np.array_equal(src_h, np.arange(OH) // rep)

    if uniform_h:
        return _upsample_uniform_rows(x, src_w, rep, OH, OW)
    return _upsample_general(x, src_h, src_w, OH, OW)


# ----------------------------------------------------------------------------
# Pure-JAX reference (gather) for validation
# ----------------------------------------------------------------------------
def _reference_nearest(x, size=None, scale_factor=2.0):
    N, C, H, W = x.shape
    OH, OW, src_h, src_w = _geometry(H, W, size, scale_factor)
    src_h = jnp.asarray(src_h)
    src_w = jnp.asarray(src_w)
    return x[:, :, src_h, :][:, :, :, src_w]


if __name__ == "__main__":
    key = jax.random.PRNGKey(0)
    x = jax.random.normal(key, (2, 4, 16, 16), dtype=jnp.float32)

    # integer scale, non-identity width -> selection-matmul fast path
    out = jax.block_until_ready(interpolate2d_nearest(x, scale_factor=2.0))
    ref = _reference_nearest(x, scale_factor=2.0)
    assert out.shape == (2, 4, 32, 32), out.shape
    assert out.dtype == x.dtype
    np.testing.assert_array_equal(np.asarray(out), np.asarray(ref))

    # integer height scale, identity width -> pure-copy fast path (no MXU)
    out1 = jax.block_until_ready(interpolate2d_nearest(x, scale_factor=(2.0, 1.0)))
    ref1 = _reference_nearest(x, scale_factor=(2.0, 1.0))
    assert out1.shape == (2, 4, 32, 16), out1.shape
    np.testing.assert_array_equal(np.asarray(out1), np.asarray(ref1))

    # non-integer scale -> general gh @ x @ gwt path
    out2 = jax.block_until_ready(interpolate2d_nearest(x, scale_factor=1.5))
    ref2 = _reference_nearest(x, scale_factor=1.5)
    assert out2.shape == (2, 4, 24, 24), out2.shape
    np.testing.assert_array_equal(np.asarray(out2), np.asarray(ref2))

    print("KERNEL_OK")
</pallas_src>

<mosaic_0001>
module attributes {stable_mosaic.version = 11 : i64} {
  func.func @_uniform_matmul_kernel(%arg0: i32, %arg1: memref<16x32xf32, #tpu.memory_space<vmem>>, %arg2: memref<128x16xf32, #tpu.memory_space<vmem>>, %arg3: memref<128x64xf32, #tpu.memory_space<vmem>>) attributes {dimension_semantics = [#tpu.dimension_semantics<parallel>], iteration_bounds = array<i64: 1>, scalar_prefetch = 0 : i64, scratch_operands = 0 : i64, tpu.core_type = #tpu.core_type<tc>, window_params = [{pipeline_mode = #tpu.pipeline_mode<synchronous>, transform_indices = @transform_0, window_bounds = array<i64: 16, 32>}, {transform_indices = @transform_1, window_bounds = array<i64: 128, 16>}, {transform_indices = @transform_2, window_bounds = array<i64: 128, 64>}]} {
    %c0 = arith.constant 0 : index
    %c0_0 = arith.constant 0 : index
    %0 = vector.load %arg2[%c0, %c0_0] : memref<128x16xf32, #tpu.memory_space<vmem>>, vector<128x16xf32>
    %c0_1 = arith.constant 0 : index
    %c0_2 = arith.constant 0 : index
    %1 = vector.load %arg1[%c0_1, %c0_2] : memref<16x32xf32, #tpu.memory_space<vmem>>, vector<16x32xf32>
    %cst = arith.constant dense<0.000000e+00> : vector<128x32xf32>
    %2 = tpu.matmul %0, %1, %cst {dimension_numbers = #tpu.dot_dimension_numbers<[1], [0], [0], [1], [0, 0, 1, 1], [], []>} : vector<128x16xf32>, vector<16x32xf32>, vector<128x32xf32> -> vector<128x32xf32>
    %c0_3 = arith.constant 0 : index
    %c0_4 = arith.constant 0 : index
    %3 = vector.load %arg3[%c0_3, %c0_4] : memref<128x64xf32, #tpu.memory_space<vmem>>, vector<128x32xf32>
    tpu.vector_store %arg3[%c0_3, %c0_4], %2 {strides = array<i32>} : memref<128x64xf32, #tpu.memory_space<vmem>>, vector<128x32xf32>,
    %c0_5 = arith.constant 0 : index
    %c32 = arith.constant 32 : index
    %4 = vector.load %arg3[%c0_5, %c32] : memref<128x64xf32, #tpu.memory_space<vmem>>, vector<128x32xf32>
    tpu.vector_store %arg3[%c0_5, %c32], %2 {strides = array<i32>} : memref<128x64xf32, #tpu.memory_space<vmem>>, vector<128x32xf32>,
    return
  }
  func.func @transform_0(%arg0: i32) -> (i32, i32) {
    %c0_i32 = arith.constant 0 : i32
    %c0_i32_0 = arith.constant 0 : i32
    %c0_i32_1 = arith.constant 0 : i32
    return %c0_i32, %c0_i32_0 : i32, i32
  }
  func.func @transform_1(%arg0: i32) -> (i32, i32) {
    %c0_i32 = arith.constant 0 : i32
    %c0_i32_0 = arith.constant 0 : i32
    return %arg0, %c0_i32 : i32, i32
  }
  func.func @transform_2(%arg0: i32) -> (i32, i32) {
    %c0_i32 = arith.constant 0 : i32
    %c0_i32_0 = arith.constant 0 : i32
    return %arg0, %c0_i32 : i32, i32
  }
}

</mosaic_0001>

<bundles_post_ra>
// kernel: tpu_custom_call.1
= control target key start
LH: loop header
LB: loop body
LE: loop exit
PB: predicated region body
PF: predicated region fallthrough
CT: control target
= control target key end

     0   :  { %vm29_vm0 = vcmask 130048   ;;  %vm143_vm1 = vcmask 261120   ;;  %s268_s18 = smov 32   ;;  %vm224_vm2 = vcmask 523520   ;;  %s498_s0 = inlined_call_operand.vmem [shape: f32[16,32], index: 0, kind: input, shape index: {}]   ;;  %s499_s1 = inlined_call_operand.vmem [shape: f32[128,16], index: 1, kind: input, shape index: {}]   ;;  %s500_s2 = inlined_call_operand.vmem [shape: f32[128,64], index: 2, kind: output, shape index: {}]  }
   0x1   :  { %v28_v0 = vld [vmem:[%s498_s0 + $0x8] sm:$0xff]  ;;  %v27_v1 = vld [vmem:[%s498_s0] sm:$0xff]  ;;  %v13_v10 = vld [vmem:[%s499_s1 + $0x10] sm:$0xff] }
   0x2   :  { %92 = vmatpush.msra.mxu0 %v28_v0  ;;  %261 = vmatpush.msra.mxu1 %v28_v0  ;;  %v11_v2 = vld [vmem:[%s499_s1] sm:$0xff]  ;;  %v12_v6 = vld [vmem:[%s499_s1 + $0x8] sm:$0xff]  ;;  %v17_v11 = vld [vmem:[%s499_s1 + $0x30] sm:$0xff] }
   0x3   :  { %v15_v3 = vld [vmem:[%s499_s1 + $0x20] sm:$0xff]  ;;  %262 = vmatpush.msra.mxu2 %v28_v0  ;;  %263 = vmatpush.msra.mxu3 %v28_v0  ;;  %v16_v7 = vld [vmem:[%s499_s1 + $0x28] sm:$0xff]  ;;  %v21_v12 = vld [vmem:[%s499_s1 + $0x50] sm:$0xff] }
   0x4   :  { %93 = vmatpush.msra.mxu0 %v27_v1  ;;  %264 = vmatpush.msra.mxu1 %v27_v1  ;;  %v19_v4 = vld [vmem:[%s499_s1 + $0x40] sm:$0xff]  ;;  %v20_v8 = vld [vmem:[%s499_s1 + $0x48] sm:$0xff]  ;;  %v25_v13 = vld [vmem:[%s499_s1 + $0x70] sm:$0xff] }
   0x5   :  { %v23_v5 = vld [vmem:[%s499_s1 + $0x60] sm:$0xff]  ;;  %245 = vmatmul.msk.f32.vlgmr.msra.gmra.mxu0 %vm29_vm0, %v11_v2  ;;  %249 = vmatmul.msk.f32.vlgmr.msra.gmra.mxu1 %vm29_vm0, %v15_v3  ;;  %v24_v9 = vld [vmem:[%s499_s1 + $0x68] sm:$0xff]  ;;  %v14_v14 = vld [vmem:[%s499_s1 + $0x18] sm:$0xff] }
   0x6   :  { %265 = vmatpush.msra.mxu2 %v27_v1  ;;  %266 = vmatpush.msra.mxu3 %v27_v1  ;;  %v18_v15 = vld [vmem:[%s499_s1 + $0x38] sm:$0xff] }
   0x7   :  { %253 = vmatmul.msk.f32.vlgmr.msra.gmra.mxu2 %vm29_vm0, %v19_v4  ;;  %257 = vmatmul.msk.f32.vlgmr.msra.gmra.mxu3 %vm29_vm0, %v23_v5  ;;  %v22_v16 = vld [vmem:[%s499_s1 + $0x58] sm:$0xff] }
   0x8   :  { %v26_v17 = vld [vmem:[%s499_s1 + $0x78] sm:$0xff] }
   0xd   :  { %246 = vmatmul.msk.f32.gmra.mxu0 %vm29_vm0, %v12_v6  ;;  %250 = vmatmul.msk.f32.gmra.mxu1 %vm29_vm0, %v16_v7 }
   0xf   :  { %254 = vmatmul.msk.f32.gmra.mxu2 %vm29_vm0, %v20_v8  ;;  %258 = vmatmul.msk.f32.gmra.mxu3 %vm29_vm0, %v24_v9 }
  0x15   :  { %247 = vmatmul.msk.f32.gmra.mxu0 %vm29_vm0, %v13_v10  ;;  %251 = vmatmul.msk.f32.gmra.mxu1 %vm29_vm0, %v17_v11 }
  0x17   :  { %255 = vmatmul.msk.f32.gmra.mxu2 %vm29_vm0, %v21_v12  ;;  %259 = vmatmul.msk.f32.gmra.mxu3 %vm29_vm0, %v25_v13 }
  0x1d   :  { %248 = vmatmul.msk.f32.gmra.mxu0 %vm29_vm0, %v14_v14  ;;  %252 = vmatmul.msk.f32.gmra.mxu1 %vm29_vm0, %v18_v15 }
  0x1f   :  { %256 = vmatmul.msk.f32.gmra.mxu2 %vm29_vm0, %v22_v16  ;;  %260 = vmatmul.msk.f32.gmra.mxu3 %vm29_vm0, %v26_v17 }
  0x82   :  { %v95_v18 = vpop.f32.mrf.mxu0  ;;  %v107_v19 = vpop.f32.mrf.mxu1 }
  0x83   :  { %144 = vst.msk [vmem:[%s500_s2] sm:$0xff] %vm143_vm1, %v95_v18  ;;  %184 = vrot.lane.b32.xlu2 %v107_v19, %s268_s18  ;;  %176 = vrot.lane.b32.xlu0 %v95_v18, %s268_s18 }
  0x84   :  { %148 = vst.msk [vmem:[%s500_s2 + $0x20] sm:$0xff] %vm143_vm1, %v107_v19 }
  0x8a   :  { %v98_v20 = vpop.f32.mrf.mxu0  ;;  %v119_v21 = vpop.f32.mrf.mxu2 }
  0x8b   :  { %145 = vst.msk [vmem:[%s500_s2 + $0x8] sm:$0xff] %vm143_vm1, %v98_v20  ;;  %v131_v22 = vpop.f32.mrf.mxu3  ;;  %192 = vrot.lane.b32.xlu2 %v119_v21, %s268_s18  ;;  %v110_v23 = vpop.f32.mrf.mxu1 }
  0x8c   :  { %152 = vst.msk [vmem:[%s500_s2 + $0x40] sm:$0xff] %vm143_vm1, %v119_v21  ;;  %200 = vrot.lane.b32.xlu0 %v131_v22, %s268_s18 }
  0x8d   :  { %156 = vst.msk [vmem:[%s500_s2 + $0x60] sm:$0xff] %vm143_vm1, %v131_v22 }
  0x8e   :  { %149 = vst.msk [vmem:[%s500_s2 + $0x28] sm:$0xff] %vm143_vm1, %v110_v23 }
  0x92   :  { %v101_v24 = vpop.f32.mrf.mxu0  ;;  %v122_v25 = vpop.f32.mrf.mxu2 }
  0x93   :  { %146 = vst.msk [vmem:[%s500_s2 + $0x10] sm:$0xff] %vm143_vm1, %v101_v24  ;;  %180 = vrot.lane.b32.xlu1 %v101_v24, %s268_s18  ;;  %186 = vrot.lane.b32.xlu2 %v110_v23, %s268_s18  ;;  %v113_v26 = vpop.f32.mrf.mxu1  ;;  %v134_v27 = vpop.f32.mrf.mxu3 }
  0x94   :  { %153 = vst.msk [vmem:[%s500_s2 + $0x48] sm:$0xff] %vm143_vm1, %v122_v25  ;;  %178 = vrot.lane.b32.xlu0 %v98_v20, %s268_s18 }
  0x95   :  { %150 = vst.msk [vmem:[%s500_s2 + $0x30] sm:$0xff] %vm143_vm1, %v113_v26 }
  0x96   :  { %157 = vst.msk [vmem:[%s500_s2 + $0x68] sm:$0xff] %vm143_vm1, %v134_v27 }
  0x9a   :  { %v125_v28 = vpop.f32.mrf.mxu2  ;;  %v104_v29 = vpop.f32.mrf.mxu0 }
  0x9b   :  { %154 = vst.msk [vmem:[%s500_s2 + $0x50] sm:$0xff] %vm143_vm1, %v125_v28  ;;  %196 = vrot.lane.b32.xlu1 %v125_v28, %s268_s18  ;;  %v116_v30 = vpop.f32.mrf.mxu1  ;;  %v137_v31 = vpop.f32.mrf.mxu3 }
  0x9c   :  { %194 = vrot.lane.b32.xlu0 %v122_v25, %s268_s18  ;;  %147 = vst.msk [vmem:[%s500_s2 + $0x18] sm:$0xff] %vm143_vm1, %v104_v29 }
  0x9d   :  { %151 = vst.msk [vmem:[%s500_s2 + $0x38] sm:$0xff] %vm143_vm1, %v116_v30 }
  0x9e   :  { %158 = vst.msk [vmem:[%s500_s2 + $0x70] sm:$0xff] %vm143_vm1, %v137_v31 }
  0xa2   :  { %v128_v32 = vpop.f32.mrf.mxu2 }
  0xa3   :  { %155 = vst.msk [vmem:[%s500_s2 + $0x58] sm:$0xff] %vm143_vm1, %v128_v32  ;;  %198 = vrot.lane.b32.xlu2 %v128_v32, %s268_s18  ;;  %182 = vrot.lane.b32.xlu1 %v104_v29, %s268_s18  ;;  %v140_v33 = vpop.f32.mrf.mxu3 }
  0xa4   :  { %188 = vrot.lane.b32.xlu0 %v113_v26, %s268_s18  ;;  %159 = vst.msk [vmem:[%s500_s2 + $0x78] sm:$0xff] %vm143_vm1, %v140_v33 }
  0xab   :  { %204 = vrot.lane.b32.xlu2 %v137_v31, %s268_s18  ;;  %190 = vrot.lane.b32.xlu1 %v116_v30, %s268_s18 }
  0xac   :  { %206 = vrot.lane.b32.xlu0 %v140_v33, %s268_s18 }
  0xb3   :  { %202 = vrot.lane.b32.xlu1 %v134_v27, %s268_s18 }
  0xdd   :  { %v185_v34 = vpop.permute.xlu2 %184 }
  0xde   :  { %229 = vst.msk [vmem:[%s500_s2 + $0x20] sm:$0xff] %vm224_vm2, %v185_v34 }
  0xe5   :  { %v193_v35 = vpop.permute.xlu2 %192 }
  0xe6   :  { %233 = vst.msk [vmem:[%s500_s2 + $0x40] sm:$0xff] %vm224_vm2, %v193_v35 }
  0xed   :  { %v187_v36 = vpop.permute.xlu2 %186 }
  0xee   :  { %230 = vst.msk [vmem:[%s500_s2 + $0x28] sm:$0xff] %vm224_vm2, %v187_v36 }
  0xf5   :  { %v177_v37 = vpop.permute.xlu0 %176 }
  0xf6   :  { %225 = vst.msk [vmem:[%s500_s2] sm:$0xff] %vm224_vm2, %v177_v37 }
  0xfd   :  { %v199_v38 = vpop.permute.xlu2 %198 }
  0xfe   :  { %236 = vst.msk [vmem:[%s500_s2 + $0x58] sm:$0xff] %vm224_vm2, %v199_v38  ;;  %v201_v39 = vpop.permute.xlu0 %200 }
  0xff   :  { %237 = vst.msk [vmem:[%s500_s2 + $0x60] sm:$0xff] %vm224_vm2, %v201_v39 }
 0x105   :  { %v205_v40 = vpop.permute.xlu2 %204  ;;  %v181_v41 = vpop.permute.xlu1 %180 }
 0x106   :  { %239 = vst.msk [vmem:[%s500_s2 + $0x70] sm:$0xff] %vm224_vm2, %v205_v40  ;;  %v179_v42 = vpop.permute.xlu0 %178 }
 0x107   :  { %226 = vst.msk [vmem:[%s500_s2 + $0x8] sm:$0xff] %vm224_vm2, %v179_v42 }
 0x108   :  { %227 = vst.msk [vmem:[%s500_s2 + $0x10] sm:$0xff] %vm224_vm2, %v181_v41 }
 0x10d   :  { %v197_v43 = vpop.permute.xlu1 %196 }
 0x10e   :  { %v195_v44 = vpop.permute.xlu0 %194  ;;  %235 = vst.msk [vmem:[%s500_s2 + $0x50] sm:$0xff] %vm224_vm2, %v197_v43 }
 0x10f   :  { %234 = vst.msk [vmem:[%s500_s2 + $0x48] sm:$0xff] %vm224_vm2, %v195_v44 }
 0x115   :  { %v183_v45 = vpop.permute.xlu1 %182 }
 0x116   :  { %v189_v46 = vpop.permute.xlu0 %188  ;;  %228 = vst.msk [vmem:[%s500_s2 + $0x18] sm:$0xff] %vm224_vm2, %v183_v45 }
 0x117   :  { %231 = vst.msk [vmem:[%s500_s2 + $0x30] sm:$0xff] %vm224_vm2, %v189_v46 }
 0x11d   :  { %v191_v47 = vpop.permute.xlu1 %190 }
 0x11e   :  { %232 = vst.msk [vmem:[%s500_s2 + $0x38] sm:$0xff] %vm224_vm2, %v191_v47  ;;  %v207_v48 = vpop.permute.xlu0 %206 }
 0x11f   :  { %240 = vst.msk [vmem:[%s500_s2 + $0x78] sm:$0xff] %vm224_vm2, %v207_v48 }
 0x125   :  { %v203_v49 = vpop.permute.xlu1 %202 }
 0x126   :  { %238 = vst.msk [vmem:[%s500_s2 + $0x68] sm:$0xff] %vm224_vm2, %v203_v49 }

</bundles_post_ra>
